<compile_context>
chip_gen: v7x
topology: tpu7x:2x2x1
jax: 0.10.0
libtpu: 0.0.40
codegen_flags: <defaults>
</compile_context>

<pallas_src>
import jax
import jax.numpy as jnp
from jax.experimental import pallas as pl
from jax.experimental.pallas import tpu as pltpu


def _se_kernel(x_ref, w1t_ref, b1_ref, w2t_ref, b2_ref, o_ref):
    x = x_ref[...]                                                # (TB, C, HW), input dtype

    # --- squeeze: global average pool; f32 accumulation, no explicit f32 slab copy ---
    pooled = jnp.mean(x, axis=-1, dtype=jnp.float32)              # (TB, C) f32

    # --- excitation: fc1 -> relu -> fc2 -> sigmoid as lane-dense MXU matmuls ---
    h = jnp.dot(pooled, w1t_ref[...], preferred_element_type=jnp.float32)
    h = jnp.maximum(h + b1_ref[...], 0.0)                         # (TB, Cr)
    s = jnp.dot(h, w2t_ref[...], preferred_element_type=jnp.float32)
    s = jax.nn.sigmoid(s + b2_ref[...]).astype(o_ref.dtype)       # (TB, C)

    # --- scale: broadcast the per-channel gate over the spatial lanes, input dtype ---
    o_ref[...] = x * s[:, :, None]


def _vmem_capacity_bytes():
    """Physical VMEM per core (64 MiB v7x, 128 MiB v5e/v6e); conservative fallback."""
    try:
        cap = getattr(pltpu.get_tpu_info(), "vmem_capacity_bytes", None)
        if cap:
            return int(cap)
    except Exception:
        pass
    return 64 * 1024 * 1024


def _ceil_to(v, m):
    return -(-v // m) * m


def _padded_tile_bytes(rows, cols, itemsize):
    """VMEM footprint of a 2-D tile including sublane/lane tile padding."""
    sub = 8 * max(1, 4 // itemsize)                  # sublane packing: 8/16/32 for 4/2/1 B
    return _ceil_to(rows, sub) * _ceil_to(cols, 128) * itemsize


def _resident_spec(shape, single_buffer):
    """BlockSpec for a grid-invariant operand; single-buffered when requested/supported."""
    index_map = lambda n: (0,) * len(shape)
    if single_buffer:
        try:
            return pl.BlockSpec(shape, index_map, pipeline_mode=pl.Buffered(1))
        except Exception:
            pass
    return pl.BlockSpec(shape, index_map)


def se_module(x, w1, b1, w2, b2):
    """SEModule forward.  x: (N, C, H, W); w1: (Cr, C); b1: (Cr,); w2: (C, Cr); b2: (C,)."""
    N, C, H, W = x.shape
    HW = H * W
    Cr = w1.shape[0]
    itemsize = jnp.dtype(x.dtype).itemsize

    x_in = x.reshape(N, C, HW)                       # free: contiguous NCHW -> (N, C, HW)

    w1t = jnp.transpose(w1).astype(jnp.float32)      # (C, Cr)
    w2t = jnp.transpose(w2).astype(jnp.float32)      # (Cr, C)
    b1r = b1.reshape(1, Cr).astype(jnp.float32)
    b2r = b2.reshape(1, C).astype(jnp.float32)

    # --- tile sizing / VMEM accounting ---------------------------------------------
    vmem_cap = _vmem_capacity_bytes()
    vmem_limit = int(vmem_cap * 0.75)                # 48 MiB on v7x, 96 MiB on v5e/v6e

    sample_bytes = _padded_tile_bytes(C, HW, itemsize)            # one sample, lane-padded
    f32_temp = _padded_tile_bytes(C, HW, 4) if itemsize < 4 else 0
    per_sample_cost = 4 * sample_bytes + f32_temp    # 2x-in + 2x-out buffers (+ pool temp)

    weight_bytes = 2 * (_padded_tile_bytes(C, Cr, 4) + _padded_tile_bytes(Cr, C, 4)
                        + _padded_tile_bytes(1, Cr, 4) + _padded_tile_bytes(1, C, 4))
    single_buffer_weights = weight_bytes > (2 << 20)  # only worth it for big resident weights
    slack = 4 * 1024 * 1024                           # compiler scratch headroom
    x_budget = max(per_sample_cost, vmem_limit - weight_bytes - slack)

    TARGET_BLOCK_BYTES = 4 * 1024 * 1024              # ~HBM roofline on all generations
    MIN_GRID_STEPS = 4                                # 2 per TensorCore on dual-TC chips

    tb_target = max(1, TARGET_BLOCK_BYTES // sample_bytes)
    tb_vmem = max(1, x_budget // per_sample_cost)
    TB = max(1, min(N, 128, tb_target, tb_vmem))
    if N >= MIN_GRID_STEPS:
        TB = min(TB, pl.cdiv(N, MIN_GRID_STEPS))
    grid = (pl.cdiv(N, TB),)                          # no pad / slice: boundary block is masked

    cost = pl.CostEstimate(
        flops=int(2 * N * C * HW + 4 * N * C * Cr),
        transcendentals=int(N * C),
        bytes_accessed=int(2 * N * C * HW * itemsize
                           + 4 * (w1.size + w2.size + b1.size + b2.size)),
    )

    out = pl.pallas_call(
        _se_kernel,
        out_shape=jax.ShapeDtypeStruct((N, C, HW), x.dtype),
        grid_spec=pltpu.PrefetchScalarGridSpec(
            num_scalar_prefetch=0,
            grid=grid,
            in_specs=[
                pl.BlockSpec((TB, C, HW), lambda n: (n, 0, 0)),        # x slab (TB samples)
                _resident_spec((C, Cr), single_buffer_weights),        # fc1 weight^T
                _resident_spec((1, Cr), single_buffer_weights),        # fc1 bias
                _resident_spec((Cr, C), single_buffer_weights),        # fc2 weight^T
                _resident_spec((1, C), single_buffer_weights),         # fc2 bias
            ],
            out_specs=pl.BlockSpec((TB, C, HW), lambda n: (n, 0, 0)),
        ),
        compiler_params=pltpu.CompilerParams(
            dimension_semantics=("parallel",),
            vmem_limit_bytes=vmem_limit,
        ),
        cost_estimate=cost,
    )(x_in, w1t, b1r, w2t, b2r)

    return out.reshape(N, C, H, W)


def se_module_ref(x, w1, b1, w2, b2):
    """Pure-JAX reference mirroring the PyTorch forward."""
    pooled = jnp.mean(x, axis=(2, 3))                             # (N, C)
    h = jnp.maximum(pooled @ w1.T + b1, 0.0)                      # (N, Cr)
    s = jax.nn.sigmoid(h @ w2.T + b2)                             # (N, C)
    return x * s[:, :, None, None]


if __name__ == "__main__":
    key = jax.random.PRNGKey(0)

    def run_case(N, C, H, W, reduction, k):
        Cr = max(1, C // reduction)
        kx, kw1, kb1, kw2, kb2 = jax.random.split(k, 5)
        x = jax.random.normal(kx, (N, C, H, W), dtype=jnp.float32)
        w1 = jax.random.normal(kw1, (Cr, C), dtype=jnp.float32) * 0.1   # fc1.weight (Cr,C,1,1) squeezed
        b1 = jax.random.normal(kb1, (Cr,), dtype=jnp.float32) * 0.1     # fc1.bias
        w2 = jax.random.normal(kw2, (C, Cr), dtype=jnp.float32) * 0.1   # fc2.weight (C,Cr,1,1) squeezed
        b2 = jax.random.normal(kb2, (C,), dtype=jnp.float32) * 0.1      # fc2.bias

        out = jax.block_until_ready(se_module(x, w1, b1, w2, b2))
        ref = se_module_ref(x, w1, b1, w2, b2)
        assert out.shape == x.shape and out.dtype == x.dtype
        assert jnp.allclose(out, ref, atol=1e-5, rtol=1e-5), "mismatch vs reference"

    k1, k2 = jax.random.split(key)
    # Primary small case: SEModule(channels=4, reduction=2), batch=2, 16x16 spatial.
    run_case(2, 4, 16, 16, 2, k1)
    # Ragged-batch case (N=5 -> TB=2 -> 3 grid steps incl. a masked boundary block),
    # typical SE shape class (C=128, HW=49) with no wrapper-side transpose/pad/slice.
    run_case(5, 128, 7, 7, 16, k2)

    print("KERNEL_OK")
</pallas_src>

<mosaic_0001>
module attributes {stable_mosaic.version = 11 : i64} {
  func.func @_se_kernel(%arg0: i32, %arg1: memref<2x4x256xf32, #tpu.memory_space<vmem>>, %arg2: memref<4x2xf32, #tpu.memory_space<vmem>>, %arg3: memref<1x2xf32, #tpu.memory_space<vmem>>, %arg4: memref<2x4xf32, #tpu.memory_space<vmem>>, %arg5: memref<1x4xf32, #tpu.memory_space<vmem>>, %arg6: memref<2x4x256xf32, #tpu.memory_space<vmem>>) attributes {dimension_semantics = [#tpu.dimension_semantics<parallel>], iteration_bounds = array<i64: 1>, scalar_prefetch = 0 : i64, scratch_operands = 0 : i64, tpu.core_type = #tpu.core_type<tc>, window_params = [{transform_indices = @transform_0, window_bounds = array<i64: 2, 4, 256>}, {pipeline_mode = #tpu.pipeline_mode<synchronous>, transform_indices = @transform_1, window_bounds = array<i64: 4, 2>}, {pipeline_mode = #tpu.pipeline_mode<synchronous>, transform_indices = @transform_2, window_bounds = array<i64: 1, 2>}, {pipeline_mode = #tpu.pipeline_mode<synchronous>, transform_indices = @transform_3, window_bounds = array<i64: 2, 4>}, {pipeline_mode = #tpu.pipeline_mode<synchronous>, transform_indices = @transform_4, window_bounds = array<i64: 1, 4>}, {transform_indices = @transform_5, window_bounds = array<i64: 2, 4, 256>}]} {
    %c0 = arith.constant 0 : index
    %c0_0 = arith.constant 0 : index
    %c0_1 = arith.constant 0 : index
    %0 = vector.load %arg1[%c0, %c0_0, %c0_1] : memref<2x4x256xf32, #tpu.memory_space<vmem>>, vector<2x4x256xf32>
    %cst = arith.constant dense<0.000000e+00> : vector<2x4xf32>
    %1 = vector.multi_reduction <add>, %0, %cst [2] : vector<2x4x256xf32> to vector<2x4xf32>
    %cst_2 = arith.constant 2.560000e+02 : f32
    %2 = vector.broadcast %cst_2 : f32 to vector<2x4xf32>
    %3 = arith.divf %1, %2 : vector<2x4xf32>
    %c0_3 = arith.constant 0 : index
    %c0_4 = arith.constant 0 : index
    %4 = vector.load %arg2[%c0_3, %c0_4] : memref<4x2xf32, #tpu.memory_space<vmem>>, vector<4x2xf32>
    %cst_5 = arith.constant dense<0.000000e+00> : vector<2x2xf32>
    %5 = tpu.matmul %3, %4, %cst_5 {dimension_numbers = #tpu.dot_dimension_numbers<[1], [0], [0], [1], [0, 0, 1, 1], [], []>} : vector<2x4xf32>, vector<4x2xf32>, vector<2x2xf32> -> vector<2x2xf32>
    %c0_6 = arith.constant 0 : index
    %c0_7 = arith.constant 0 : index
    %6 = vector.load %arg3[%c0_6, %c0_7] : memref<1x2xf32, #tpu.memory_space<vmem>>, vector<1x2xf32>
    %7 = vector.broadcast %6 : vector<1x2xf32> to vector<2x2xf32>
    %8 = arith.addf %5, %7 : vector<2x2xf32>
    %cst_8 = arith.constant 0.000000e+00 : f32
    %9 = vector.broadcast %cst_8 : f32 to vector<2x2xf32>
    %10 = arith.maximumf %8, %9 : vector<2x2xf32>
    %c0_9 = arith.constant 0 : index
    %c0_10 = arith.constant 0 : index
    %11 = vector.load %arg4[%c0_9, %c0_10] : memref<2x4xf32, #tpu.memory_space<vmem>>, vector<2x4xf32>
    %cst_11 = arith.constant dense<0.000000e+00> : vector<2x4xf32>
    %12 = tpu.matmul %10, %11, %cst_11 {dimension_numbers = #tpu.dot_dimension_numbers<[1], [0], [0], [1], [0, 0, 1, 1], [], []>} : vector<2x2xf32>, vector<2x4xf32>, vector<2x4xf32> -> vector<2x4xf32>
    %c0_12 = arith.constant 0 : index
    %c0_13 = arith.constant 0 : index
    %13 = vector.load %arg5[%c0_12, %c0_13] : memref<1x4xf32, #tpu.memory_space<vmem>>, vector<1x4xf32>
    %14 = vector.broadcast %13 : vector<1x4xf32> to vector<2x4xf32>
    %15 = arith.addf %12, %14 : vector<2x4xf32>
    %16 = arith.negf %15 : vector<2x4xf32>
    %17 = math.exp %16 : vector<2x4xf32>
    %cst_14 = arith.constant 1.000000e+00 : f32
    %18 = vector.broadcast %cst_14 : f32 to vector<2x4xf32>
    %19 = arith.addf %18, %17 : vector<2x4xf32>
    %20 = arith.divf %18, %19 : vector<2x4xf32>
    %21 = vector.shape_cast %20 : vector<2x4xf32> to vector<2x4x1xf32>
    %22 = vector.broadcast %21 : vector<2x4x1xf32> to vector<2x4x256xf32>
    %23 = arith.mulf %0, %22 : vector<2x4x256xf32>
    %c0_15 = arith.constant 0 : index
    %c0_16 = arith.constant 0 : index
    %c0_17 = arith.constant 0 : index
    %24 = vector.load %arg6[%c0_15, %c0_16, %c0_17] : memref<2x4x256xf32, #tpu.memory_space<vmem>>, vector<2x4x256xf32>
    tpu.vector_store %arg6[%c0_15, %c0_16, %c0_17], %23 {strides = array<i32>} : memref<2x4x256xf32, #tpu.memory_space<vmem>>, vector<2x4x256xf32>,
    return
  }
  func.func @transform_0(%arg0: i32) -> (i32, i32, i32) {
    %c0_i32 = arith.constant 0 : i32
    %c0_i32_0 = arith.constant 0 : i32
    %c0_i32_1 = arith.constant 0 : i32
    return %arg0, %c0_i32, %c0_i32_0 : i32, i32, i32
  }
  func.func @transform_1(%arg0: i32) -> (i32, i32) {
    %c0_i32 = arith.constant 0 : i32
    %c0_i32_0 = arith.constant 0 : i32
    %c0_i32_1 = arith.constant 0 : i32
    return %c0_i32, %c0_i32_0 : i32, i32
  }
  func.func @transform_2(%arg0: i32) -> (i32, i32) {
    %c0_i32 = arith.constant 0 : i32
    %c0_i32_0 = arith.constant 0 : i32
    %c0_i32_1 = arith.constant 0 : i32
    return %c0_i32, %c0_i32_0 : i32, i32
  }
  func.func @transform_3(%arg0: i32) -> (i32, i32) {
    %c0_i32 = arith.constant 0 : i32
    %c0_i32_0 = arith.constant 0 : i32
    %c0_i32_1 = arith.constant 0 : i32
    return %c0_i32, %c0_i32_0 : i32, i32
  }
  func.func @transform_4(%arg0: i32) -> (i32, i32) {
    %c0_i32 = arith.constant 0 : i32
    %c0_i32_0 = arith.constant 0 : i32
    %c0_i32_1 = arith.constant 0 : i32
    return %c0_i32, %c0_i32_0 : i32, i32
  }
  func.func @transform_5(%arg0: i32) -> (i32, i32, i32) {
    %c0_i32 = arith.constant 0 : i32
    %c0_i32_0 = arith.constant 0 : i32
    %c0_i32_1 = arith.constant 0 : i32
    return %arg0, %c0_i32, %c0_i32_0 : i32, i32, i32
  }
}

</mosaic_0001>

<bundles_post_ra>
// kernel: tpu_custom_call.1
= control target key start
LH: loop header
LB: loop body
LE: loop exit
PB: predicated region body
PF: predicated region fallthrough
CT: control target
= control target key end

     0   :  { %10 = vsyncpa [#allocation3], 0  ;;  %s479_s0 = inlined_call_operand.hbm [shape: f32[2,4,256], index: 0, kind: input, shape index: {}]   ;;  %s480_s1 = inlined_call_operand.vmem [shape: f32[4,2], index: 1, kind: input, shape index: {}]   ;;  %s481_s2 = inlined_call_operand.vmem [shape: f32[1,2], index: 2, kind: input, shape index: {}]   ;;  %s482_s3 = inlined_call_operand.vmem [shape: f32[2,4], index: 3, kind: input, shape index: {}]   ;;  %s483_s4 = inlined_call_operand.vmem [shape: f32[1,4], index: 4, kind: input, shape index: {}]   ;;  %s484_s5 = inlined_call_operand.hbm [shape: f32[2,4,256], index: 5, kind: output, shape index: {}]  }
   0x1   :  { %11 = vsyncpa [#allocation4], 0  ;;  %s383_s18 = smov [#allocation2]   ;;  %s335_s22 = scalar_lea.hbm %s479_s0, 256 }
   0x2   :  { %s17_s19 = sshll.u32 %s383_s18, 4  ;;  %p336_p0 = scmp.ne.s32.totalorder %s479_s0, %s335_s22  ;;  %s18_s19 = int_to_ptr.vmem [resolvable:$true] %s17_s19 }
   0x3   :  { %p339_p1 = scmp.lt.u32.totalorder %s335_s22, %s479_s0 }
   0x5   :  { %p341_p2 = pnand %p339_p1, %p336_p0 }
   0x7   :  { %344 = shalt.err (!%p341_p2)
}
   0x8   :  { %s345_s27 = scalar_lea.vmem %s18_s19, 256  ;;  %p350_p4 = scmp.lt.s32.totalorder %s18_s19, %s18_s19 }
   0x9   :  { %p346_p3 = scmp.ne.s32.totalorder %s18_s19, %s345_s27  ;;  %p351_p5 = scmp.lt.s32.totalorder %s345_s27, %s345_s27 }
   0xb   :  { %p352_p6 = por %p351_p5, %p350_p4 }
   0xd   :  { %p353_p7 = pnand %p352_p6, %p346_p3 }
   0xf   :  { %356 = shalt.err (!%p353_p7)
}
  0x10   :  { %s384_s28 = smov 128   ;;  %s385_s29 = smov 8  }
  0x11   :  { %23 = dma.hbm_to_vmem [thread:$0]  %s479_s0, 256, %s18_s19, [#allocation3], %s384_s28, %s384_s28, %s385_s29  }
  0x12   :  { %379 = dma.done.wait [#allocation3], 256  }
  0x13   :  { %380 = vsyncadd [#allocation3], 4294967040  ;;  %vm43_vm0 = vcmask 1043456   ;;  %v435_v0 = vld [vmem:[#allocation2] sm:$0xff]  ;;  %v437_v1 = vld [vmem:[#allocation2 + $0x8] sm:$0xff]  ;;  %v386_v11 = vmov 0.0   ;;  %v67_v12 = vlaneseq }
  0x14   :  { %v39_v2 = vcombine.high %v435_v0, %v435_v0  ;;  %v44_v3 = vsel %vm43_vm0, %v435_v0, 0.0  ;;  %v40_v4 = vcombine.high %v437_v1, %v437_v1  ;;  %v49_v6 = vsel %vm43_vm0, %v437_v1, 0.0  ;;  %v57_v10 = vld [vmem:[%s480_s1] sm:$0xf]  ;;  %312 = vmatprep.subr.mxu0 %v386_v11  ;;  %317 = vmatprep.subr.mxu1 %v386_v11 }
  0x15   :  { %vm387_vm1 = vmmov 0   ;;  %313 = vmatpush3.msk.msra.mxu0 %vm43_vm0, %v57_v10  ;;  %v68_v13 = vand.u32 127, %v67_v12  ;;  %v70_v14 = vshrl.u32 %v67_v12, 7  ;;  %vm77_vm2 = vcmask 1041409   ;;  %v156_v23 = vld [vmem:[%s482_s3] sm:$0x3] }
  0x16   :  { %v45_v5 = vsel %vm43_vm0, %v39_v2, 0.0  ;;  %v50_v7 = vsel %vm43_vm0, %v40_v4, 0.0  ;;  %314 = vmatprep.mubr.msk.f32.mxu0 %vm387_vm1, %v386_v11  ;;  %319 = vmatprep.mubr.msk.f32.mxu1 %vm387_vm1, %v386_v11  ;;  %vm79_vm3 = vcmask 31744   ;;  %vm168_vm4 = vcmask 1041408   ;;  %v301_v24 = vld [vmem:[%s481_s2] ss:$0 sm:$0xff] }
  0x17   :  { %v46_v8 = vadd.f32 %v45_v5, %v44_v3  ;;  %v51_v9 = vadd.f32 %v50_v7, %v49_v6  ;;  %v71_v16 = vsub.s32 %v68_v13, %v70_v14  ;;  %318 = vmatpush3.msk.msra.mxu1 %vm168_vm4, %v156_v23  ;;  %vm164_vm5 = vcmask 15360   ;;  %v304_v29 = vld [vmem:[%s483_s4] ss:$0 sm:$0xff]  ;;  %s389_s2 = smov [#allocation5]  }
  0x18   :  { %v250_v36 = vsub.s32 0, %v70_v14  ;;  %v257_v39 = vsub.s32 1, %v70_v14  ;;  %v388_v41 = vmov 839922192   ;;  %s289_s3 = sshll.u32 %s389_s2, 4  ;;  %s290_s3 = int_to_ptr.vmem [resolvable:$true] %s289_s3 }
  0x19   :  { %47 = vadd.xlane.f32.xlu0 %v46_v8  ;;  %v265_v42 = vunpack.c.l.s4 %v388_v41  ;;  %s357_s4 = scalar_lea.vmem %s290_s3, 256  ;;  %p362_p9 = scmp.lt.s32.totalorder %s290_s3, %s290_s3 }
  0x1a   :  { %p358_p8 = scmp.ne.s32.totalorder %s290_s3, %s357_s4  ;;  %p363_p10 = scmp.lt.s32.totalorder %s357_s4, %s357_s4 }
  0x1b   :  { %v266_v43 = vunpack.c.0.s8 %v265_v42 }
  0x1c   :  { %p364_p11 = por %p363_p10, %p362_p9 }
  0x1d   :  { %52 = vadd.xlane.f32.xlu0 %v51_v9  ;;  %v269_v44 = vsub.s32 %v266_v43, %v70_v14 }
  0x1e   :  { %p365_p12 = pnand %p364_p11, %p358_p8 }
  0xa6   :  { %v48_v15 = vpop.xlane.xlu0 %47 }
  0xa7   :  { %v55_v17 = vmul.f32 0.00390625, %v48_v15 }
  0xa9   :  { %v72_v20 = vrot.slane %v55_v17, %v71_v16 }
  0xaa   :  { %v53_v18 = vpop.xlane.xlu0 %52 }
  0xab   :  { %v56_v19 = vmul.f32 0.00390625, %v53_v18 }
  0xad   :  { %v76_v21 = vrot.slane %v56_v19, %v71_v16 }
  0xaf   :  { %v78_v22 = vsel %vm77_vm2, %v76_v21, %v72_v20 }
  0xb0   :  { %315 = vmatmul.mubr.msk.f32.vlgmr.msra.gmra.mrb[0].mxu0 %vm79_vm3, %v78_v22 }
 0x183   :  { %v151_v25 = vpop.f32.mrb[0].mxu0 }
 0x184   :  { %v152_v26 = vadd.f32 %v301_v24, %v151_v25  ;;  %v316_v27 = vpop.f32.mrb[1].mxu0 }
 0x186   :  { %v155_v28 = vmax.f32 %v152_v26, 0.0 }
 0x188   :  { %320 = vmatmul.mubr.msk.f32.vlgmr.msra.gmra.mrb[0].mxu1 %vm164_vm5, %v155_v28 }
 0x25b   :  { %v238_v30 = vpop.f32.mrb[0].mxu1 }
 0x25c   :  { %v239_v31 = vadd.f32 %v304_v29, %v238_v30  ;;  %v321_v32 = vpop.f32.mrb[1].mxu1 }
 0x25e   :  { %v307_v33 = vmul.f32 -1.442695, %v239_v31 }
 0x260   :  { %331 = vpow2.f32 %v307_v33 }
 0x26a   :  { %v332_v34 = vpop.eup %331 }
 0x26b   :  { %v245_v35 = vadd.f32 1.0, %v332_v34 }
 0x26d   :  { %333 = vrcp.f32 %v245_v35 }
 0x277   :  { %v334_v37 = vpop.eup %333 }
 0x278   :  { %v251_v38 = vrot.slane %v334_v37, %v250_v36  ;;  %v258_v40 = vrot.slane %v334_v37, %v257_v39 }
 0x27a   :  { %253 = vbcast.lane.b32.xlu1 %v251_v38, 256 }
 0x27e   :  { %260 = vbcast.lane.b32.xlu1 %v258_v40, 256 }
 0x2ec   :  { %v254_v45 = vpop.permute.xlu1 %253 }
 0x2ed   :  { %v270_v46 = vrot.slane %v254_v45, %v269_v44 }
 0x2ef   :  { %v280_v47 = vmul.f32 %v270_v46, %v435_v0 }
 0x2f0   :  { %v261_v48 = vpop.permute.xlu1 %260 }
 0x2f1   :  { %282 = vst [vmem:[#allocation5] sm:$0xff] %v280_v47  ;;  %v277_v49 = vrot.slane %v261_v48, %v269_v44 }
 0x2f3   :  { %v281_v50 = vmul.f32 %v277_v49, %v437_v1 }
 0x2f5   :  { %283 = vst [vmem:[#allocation5 + $0x8] sm:$0xff] %v281_v50 }
 0x2f6   :  { %368 = shalt.err (!%p365_p12)
}
 0x2f7   :  { %s369_s15 = scalar_lea.hbm %s484_s5, 256 }
 0x2f8   :  { %p370_p13 = scmp.ne.s32.totalorder %s484_s5, %s369_s15  ;;  %p373_p0 = scmp.lt.u32.totalorder %s369_s15, %s484_s5 }
 0x2fa   :  { %p375_p1 = pnand %p373_p0, %p370_p13 }
 0x2fc   :  { %378 = shalt.err (!%p375_p1)
}
 0x2fd   :  { %295 = dma.vmem_to_hbm [thread:$0]  %s290_s3, 256, %s484_s5, [#allocation4], %s384_s28, %s384_s28, %s385_s29  }
 0x2fe   :  { %381 = dma.done.wait [#allocation4], 256  }
 0x2ff   :  { %382 = vsyncadd [#allocation4], 4294967040 }
 0x300   :  { %299 = vsyncpa [#allocation3], 1 }
 0x301   :  { %300 = vsyncpa [#allocation4], 1 }

</bundles_post_ra>
